<compile_context>
chip_gen: v7x
topology: tpu7x:2x2x1
jax: 0.10.0
libtpu: 0.0.40
codegen_flags: <defaults>
</compile_context>

<pallas_src>
import functools
import math

import jax
import jax.numpy as jnp
from jax.experimental import pallas as pl
from jax.experimental.pallas import tpu as pltpu

CACHE_NUM = 64  # hard-coded in SelectiveAttention.forward


# ----------------------------------------------------------------------------
# Fused kernel: c_attn + cache concat + surviving-head attention + scramble + c_proj
# ----------------------------------------------------------------------------
def _fused_attn_kernel(x_ref, qc_ref, kc_ref, vc_ref, w1_ref, b1_ref,
                       w2_ref, b2_ref, o_ref, *,
                       n_surv, hs, d_min, a_min, cache_num, scale,
                       use_bf16, approx_recip):
    T, E = x_ref.shape
    Es = n_surv * hs                        # q/k/v width for surviving heads
    S = qc_ref.shape[0] + T                 # full (cache + new) sequence length
    mxu_dtype = jnp.bfloat16 if use_bf16 else jnp.float32

    def mm(a, b, cdims):
        # MXU matmul, optionally bf16 operands, always f32 accumulation.
        return jax.lax.dot_general(a.astype(mxu_dtype), b.astype(mxu_dtype),
                                   (cdims, ((), ())),
                                   preferred_element_type=jnp.float32)

    # ---- c_attn restricted to the surviving heads' q/k/v columns ------------
    qkv = mm(x_ref[...], w1_ref[...], ((1,), (0,))) + b1_ref[...]     # (T, 3*Es)

    # ---- in-sentence cache concat (cache first, then new tokens) ------------
    q = jnp.concatenate([qc_ref[...], qkv[:, 0:Es]], axis=0)          # (S, Es)
    k = jnp.concatenate([kc_ref[...], qkv[:, Es:2 * Es]], axis=0)     # (S, Es)
    v = jnp.concatenate([vc_ref[...], qkv[:, 2 * Es:3 * Es]], axis=0)  # (S, Es)

    # ---- attention: surviving heads only, full (non-causal) softmax ---------
    yt_blocks = []
    for j in range(n_surv):
        lo = j * hs
        q_h = q[:, lo:lo + hs]                                        # (S, hs)
        k_h = k[:, lo:lo + hs]
        # scores[s, t] = q_h[s] . k_h[t]   (last-dim contraction)
        s_h = mm(q_h, k_h, ((1,), (1,))) * scale                      # (S, S) f32
        s_h = s_h - jnp.max(s_h, axis=-1, keepdims=True)
        p_h = jnp.exp(s_h)                                            # f32 EUP
        denom = jnp.sum(p_h, axis=-1, keepdims=True)
        if approx_recip:
            p_h = p_h * pl.reciprocal(denom, approx=True)
        else:
            p_h = p_h / denom
        dlo = d_min if j == 0 else 0        # first head: skip dead output dims
        v_h = v[:, lo + dlo:lo + hs]                                  # (S, hs-dlo)
        # yT[d, s] = sum_t v_h[t, d] * p_h[s, t]  ->  (hs-dlo, S)
        # i.e. (p_h @ v_h)^T straight from the MXU (no XLU transpose).
        yt_blocks.append(mm(v_h, p_h, ((0,), (1,))))
    yt = yt_blocks[0] if n_surv == 1 else jnp.concatenate(yt_blocks, axis=0)
    # yt local row r corresponds to global head-transposed row a_min + r.

    # ---- reproduce y.transpose(1,2).contiguous().view(-1, E)[cache_num:] ----
    # Row i of the surviving output is the flat range
    # [(cache_num+i)*E, (cache_num+i+1)*E) of the (E, S) head-transposed
    # matrix; assemble it from static in-register slices (<= 2 segments/row).
    base = a_min * S
    n_out = o_ref.shape[0]
    rows = []
    for i in range(n_out):
        f = (cache_num + i) * E - base
        segs = []
        c = 0
        while c < E:
            a, b = f // S, f % S
            take = min(S - b, E - c)
            segs.append(yt[a:a + 1, b:b + take])
            f += take
            c += take
        rows.append(segs[0] if len(segs) == 1 else
                    jnp.concatenate(segs, axis=1))
    z = rows[0] if n_out == 1 else jnp.concatenate(rows, axis=0)      # (n_out, E)

    # ---- c_proj ---------------------------------------------------------------
    o_ref[...] = mm(z, w2_ref[...], ((1,), (0,))) + b2_ref[...]


# ----------------------------------------------------------------------------
# Wrapper: single pallas_call, everything resident in VMEM
# ----------------------------------------------------------------------------
def causal_self_attention_forward(params, x, q_c, k_c, v_c, *, n_head, n_embd,
                                  use_bf16=True, approx_recip=True):
    T, E = x.shape
    assert E == n_embd and E % n_head == 0
    hs = E // n_head
    cache_len = q_c.shape[0]                 # the module assumes 64 cached tokens
    S = cache_len + T
    assert S > CACHE_NUM
    n_out = S - CACHE_NUM                    # rows surviving the [cache_num:] slice
    scale = 1.0 / math.sqrt(hs)

    # Trace-time dead-work analysis of the scramble + slice.
    a_min = (CACHE_NUM * E) // S             # first head-transposed row that is read
    h_min = a_min // hs                      # first surviving head
    d_min = a_min - h_min * hs               # first surviving dim of that head
    n_surv = n_head - h_min
    Es = n_surv * hs
    col0 = h_min * hs

    w1 = params["c_attn_w"]                  # (E, 3E)
    b1 = params["c_attn_b"]                  # (3E,)
    w2 = params["c_proj_w"]                  # (E, E)
    b2 = params["c_proj_b"]                  # (E,)

    # Slice c_attn weights/bias and caches to the surviving heads' columns.
    w1_s = jnp.concatenate([w1[:, col0:E],
                            w1[:, E + col0:2 * E],
                            w1[:, 2 * E + col0:3 * E]], axis=1)       # (E, 3*Es)
    b1_s = jnp.concatenate([b1[col0:E], b1[E + col0:2 * E],
                            b1[2 * E + col0:3 * E]]).reshape(1, 3 * Es)
    qc_s = q_c[:, col0:E]
    kc_s = k_c[:, col0:E]
    vc_s = v_c[:, col0:E]

    kern = functools.partial(
        _fused_attn_kernel, n_surv=n_surv, hs=hs, d_min=d_min, a_min=a_min,
        cache_num=CACHE_NUM, scale=scale, use_bf16=use_bf16,
        approx_recip=approx_recip)

    pv_rows = E - a_min
    flops = int(2 * T * E * 3 * Es               # c_attn (surviving columns only)
                + n_surv * 2 * S * S * hs        # qk^T, surviving heads
                + 2 * S * S * pv_rows            # pv (transposed, surviving rows)
                + 2 * n_out * E * E)             # c_proj
    transcendentals = int(n_surv * S * S)        # exp in softmax
    bytes_accessed = int(4 * (T * E + 3 * cache_len * Es + E * 3 * Es + 3 * Es
                              + E * E + E + n_out * E))

    vmem = pl.BlockSpec(memory_space=pltpu.MemorySpace.VMEM)
    return pl.pallas_call(
        kern,
        out_shape=jax.ShapeDtypeStruct((n_out, E), jnp.float32),
        in_specs=[vmem] * 8,
        out_specs=vmem,
        cost_estimate=pl.CostEstimate(flops=flops,
                                      transcendentals=transcendentals,
                                      bytes_accessed=bytes_accessed),
    )(x, qc_s, kc_s, vc_s, w1_s, b1_s, w2, b2.reshape(1, E))


# ----------------------------------------------------------------------------
# Pure-JAX reference (mirrors the PyTorch forward literally) for validation
# ----------------------------------------------------------------------------
def _reference_forward(params, x, q_c, k_c, v_c, *, n_head, n_embd):
    hs = n_embd // n_head
    qkv = x @ params["c_attn_w"] + params["c_attn_b"]
    q, k, v = jnp.split(qkv, 3, axis=1)
    q = jnp.concatenate([q_c, q], axis=0)
    k = jnp.concatenate([k_c, k], axis=0)
    v = jnp.concatenate([v_c, v], axis=0)
    S = q.shape[0]
    qh = q.reshape(S, n_head, hs).transpose(1, 0, 2)
    kh = k.reshape(S, n_head, hs).transpose(1, 0, 2)
    vh = v.reshape(S, n_head, hs).transpose(1, 0, 2)
    att = jnp.einsum("hqd,hkd->hqk", qh, kh) * (1.0 / math.sqrt(hs))
    att = jax.nn.softmax(att, axis=-1)           # bias buffer never applied
    y = jnp.einsum("hqk,hkd->hqd", att, vh)
    y = jnp.transpose(y, (0, 2, 1)).reshape(-1, n_embd)   # the "scramble"
    y = y[CACHE_NUM:, :]
    return y @ params["c_proj_w"] + params["c_proj_b"]


# ----------------------------------------------------------------------------
# Deterministic parameter init (matching nn.init.uniform_ / bias.fill_(0.1))
# ----------------------------------------------------------------------------
def init_params(key, n_embd):
    k1, k2 = jax.random.split(key)
    # torch Linear weight is (out, in); we store the transpose (in, out)
    c_attn_w = jax.random.uniform(k1, (3 * n_embd, n_embd), jnp.float32).T
    c_attn_b = jnp.full((3 * n_embd,), 0.1, jnp.float32)
    c_proj_w = jax.random.uniform(k2, (n_embd, n_embd), jnp.float32).T
    c_proj_b = jnp.full((n_embd,), 0.1, jnp.float32)
    return {
        "c_attn_w": c_attn_w,
        "c_attn_b": c_attn_b,
        "c_proj_w": c_proj_w,
        "c_proj_b": c_proj_b,
    }


if __name__ == "__main__":
    n_embd = 32
    n_head = 4
    seq = 8              # new tokens
    cache = CACHE_NUM    # cache length is hard-coded to 64 in the module

    key = jax.random.PRNGKey(0)
    kp, kx, kq, kk, kv = jax.random.split(key, 5)

    params = init_params(kp, n_embd)
    x = jax.random.normal(kx, (seq, n_embd), jnp.float32)
    q_c = jax.random.normal(kq, (cache, n_embd), jnp.float32)
    k_c = jax.random.normal(kk, (cache, n_embd), jnp.float32)
    v_c = jax.random.normal(kv, (cache, n_embd), jnp.float32)

    # Fast path: bf16 MXU operands + approx reciprocal (production config).
    fwd_fast = jax.jit(functools.partial(
        causal_self_attention_forward, n_head=n_head, n_embd=n_embd,
        use_bf16=True, approx_recip=True))
    # Debug path: exact f32 matmuls + exact reciprocal, for tight validation.
    fwd_exact = jax.jit(functools.partial(
        causal_self_attention_forward, n_head=n_head, n_embd=n_embd,
        use_bf16=False, approx_recip=False))

    y = fwd_fast(params, x, q_c, k_c, v_c)
    jax.block_until_ready(y)
    assert y.shape == (seq, n_embd), y.shape

    y_exact = fwd_exact(params, x, q_c, k_c, v_c)
    jax.block_until_ready(y_exact)

    with jax.default_matmul_precision("highest"):
        y_ref = _reference_forward(params, x, q_c, k_c, v_c,
                                   n_head=n_head, n_embd=n_embd)

    err_exact = float(jnp.linalg.norm(y_exact - y_ref) / jnp.linalg.norm(y_ref))
    err_fast = float(jnp.linalg.norm(y - y_ref) / jnp.linalg.norm(y_ref))
    assert err_exact < 1e-3, f"exact-path relative error too large: {err_exact}"
    assert err_fast < 5e-2, f"bf16-path relative error too large: {err_fast}"

    print("KERNEL_OK")
</pallas_src>

<mosaic_0001>
module attributes {stable_mosaic.version = 11 : i64} {
  func.func @_fused_attn_kernel(%arg0: memref<8x32xf32, #tpu.memory_space<vmem>>, %arg1: memref<64x8xf32, #tpu.memory_space<vmem>>, %arg2: memref<64x8xf32, #tpu.memory_space<vmem>>, %arg3: memref<64x8xf32, #tpu.memory_space<vmem>>, %arg4: memref<32x24xf32, #tpu.memory_space<vmem>>, %arg5: memref<1x24xf32, #tpu.memory_space<vmem>>, %arg6: memref<32x32xf32, #tpu.memory_space<vmem>>, %arg7: memref<1x32xf32, #tpu.memory_space<vmem>>, %arg8: memref<8x32xf32, #tpu.memory_space<vmem>>) attributes {dimension_semantics = [], scalar_prefetch = 0 : i64, scratch_operands = 0 : i64, tpu.core_type = #tpu.core_type<tc>} {
    %c0 = arith.constant 0 : index
    %c0_0 = arith.constant 0 : index
    %0 = vector.load %arg0[%c0, %c0_0] : memref<8x32xf32, #tpu.memory_space<vmem>>, vector<8x32xf32>
    %c0_1 = arith.constant 0 : index
    %c0_2 = arith.constant 0 : index
    %1 = vector.load %arg4[%c0_1, %c0_2] : memref<32x24xf32, #tpu.memory_space<vmem>>, vector<32x24xf32>
    %2 = arith.truncf %0 : vector<8x32xf32> to vector<8x32xbf16>
    %3 = arith.truncf %1 : vector<32x24xf32> to vector<32x24xbf16>
    %cst = arith.constant dense<0.000000e+00> : vector<8x24xf32>
    %4 = tpu.matmul %2, %3, %cst {dimension_numbers = #tpu.dot_dimension_numbers<[1], [0], [0], [1], [0, 0, 1, 1], [], []>} : vector<8x32xbf16>, vector<32x24xbf16>, vector<8x24xf32> -> vector<8x24xf32>
    %c0_3 = arith.constant 0 : index
    %c0_4 = arith.constant 0 : index
    %5 = vector.load %arg5[%c0_3, %c0_4] : memref<1x24xf32, #tpu.memory_space<vmem>>, vector<1x24xf32>
    %6 = vector.broadcast %5 : vector<1x24xf32> to vector<8x24xf32>
    %7 = arith.addf %4, %6 : vector<8x24xf32>
    %c0_5 = arith.constant 0 : index
    %c0_6 = arith.constant 0 : index
    %8 = vector.load %arg1[%c0_5, %c0_6] : memref<64x8xf32, #tpu.memory_space<vmem>>, vector<64x8xf32>
    %9 = vector.extract_strided_slice %7 {offsets = [0, 0], sizes = [8, 8], strides = [1, 1]} : vector<8x24xf32> to vector<8x8xf32>
    %10 = tpu.concatenate %8, %9 in 0 : vector<64x8xf32>, vector<8x8xf32> -> vector<72x8xf32>
    %c0_7 = arith.constant 0 : index
    %c0_8 = arith.constant 0 : index
    %11 = vector.load %arg2[%c0_7, %c0_8] : memref<64x8xf32, #tpu.memory_space<vmem>>, vector<64x8xf32>
    %12 = vector.extract_strided_slice %7 {offsets = [0, 8], sizes = [8, 8], strides = [1, 1]} : vector<8x24xf32> to vector<8x8xf32>
    %13 = tpu.concatenate %11, %12 in 0 : vector<64x8xf32>, vector<8x8xf32> -> vector<72x8xf32>
    %c0_9 = arith.constant 0 : index
    %c0_10 = arith.constant 0 : index
    %14 = vector.load %arg3[%c0_9, %c0_10] : memref<64x8xf32, #tpu.memory_space<vmem>>, vector<64x8xf32>
    %15 = vector.extract_strided_slice %7 {offsets = [0, 16], sizes = [8, 8], strides = [1, 1]} : vector<8x24xf32> to vector<8x8xf32>
    %16 = tpu.concatenate %14, %15 in 0 : vector<64x8xf32>, vector<8x8xf32> -> vector<72x8xf32>
    %17 = arith.truncf %10 : vector<72x8xf32> to vector<72x8xbf16>
    %18 = arith.truncf %13 : vector<72x8xf32> to vector<72x8xbf16>
    %cst_11 = arith.constant dense<0.000000e+00> : vector<72x72xf32>
    %19 = tpu.matmul %17, %18, %cst_11 {dimension_numbers = #tpu.dot_dimension_numbers<[1], [1], [0], [0], [0, 0, 1, 0], [], []>} : vector<72x8xbf16>, vector<72x8xbf16>, vector<72x72xf32> -> vector<72x72xf32>
    %cst_12 = arith.constant 0.353553385 : f32
    %20 = vector.broadcast %cst_12 : f32 to vector<72x72xf32>
    %21 = arith.mulf %19, %20 : vector<72x72xf32>
    %cst_13 = arith.constant dense<0xFF800000> : vector<72xf32>
    %22 = vector.multi_reduction <maximumf>, %21, %cst_13 [1] : vector<72x72xf32> to vector<72xf32>
    %23 = vector.shape_cast %22 : vector<72xf32> to vector<72x1xf32>
    %24 = vector.broadcast %23 : vector<72x1xf32> to vector<72x72xf32>
    %25 = arith.subf %21, %24 : vector<72x72xf32>
    %26 = math.exp %25 : vector<72x72xf32>
    %cst_14 = arith.constant dense<0.000000e+00> : vector<72xf32>
    %27 = vector.multi_reduction <add>, %26, %cst_14 [1] : vector<72x72xf32> to vector<72xf32>
    %28 = vector.shape_cast %27 : vector<72xf32> to vector<72x1xf32>
    %29 = tpu.reciprocal %28 {approx = true} : vector<72x1xf32> -> vector<72x1xf32>
    %30 = vector.broadcast %29 : vector<72x1xf32> to vector<72x72xf32>
    %31 = arith.mulf %26, %30 : vector<72x72xf32>
    %32 = vector.extract_strided_slice %16 {offsets = [0, 4], sizes = [72, 4], strides = [1, 1]} : vector<72x8xf32> to vector<72x4xf32>
    %33 = arith.truncf %32 : vector<72x4xf32> to vector<72x4xbf16>
    %34 = arith.truncf %31 : vector<72x72xf32> to vector<72x72xbf16>
    %cst_15 = arith.constant dense<0.000000e+00> : vector<4x72xf32>
    %35 = tpu.matmul %33, %34, %cst_15 {dimension_numbers = #tpu.dot_dimension_numbers<[0], [1], [1], [0], [0, 1, 1, 0], [], []>} : vector<72x4xbf16>, vector<72x72xbf16>, vector<4x72xf32> -> vector<4x72xf32>
    %36 = vector.extract_strided_slice %35 {offsets = [0, 32], sizes = [1, 32], strides = [1, 1]} : vector<4x72xf32> to vector<1x32xf32>
    %37 = vector.extract_strided_slice %35 {offsets = [0, 64], sizes = [1, 8], strides = [1, 1]} : vector<4x72xf32> to vector<1x8xf32>
    %38 = vector.extract_strided_slice %35 {offsets = [1, 0], sizes = [1, 24], strides = [1, 1]} : vector<4x72xf32> to vector<1x24xf32>
    %39 = tpu.concatenate %37, %38 in 1 : vector<1x8xf32>, vector<1x24xf32> -> vector<1x32xf32>
    %40 = vector.extract_strided_slice %35 {offsets = [1, 24], sizes = [1, 32], strides = [1, 1]} : vector<4x72xf32> to vector<1x32xf32>
    %41 = vector.extract_strided_slice %35 {offsets = [1, 56], sizes = [1, 16], strides = [1, 1]} : vector<4x72xf32> to vector<1x16xf32>
    %42 = vector.extract_strided_slice %35 {offsets = [2, 0], sizes = [1, 16], strides = [1, 1]} : vector<4x72xf32> to vector<1x16xf32>
    %43 = tpu.concatenate %41, %42 in 1 : vector<1x16xf32>, vector<1x16xf32> -> vector<1x32xf32>
    %44 = vector.extract_strided_slice %35 {offsets = [2, 16], sizes = [1, 32], strides = [1, 1]} : vector<4x72xf32> to vector<1x32xf32>
    %45 = vector.extract_strided_slice %35 {offsets = [2, 48], sizes = [1, 24], strides = [1, 1]} : vector<4x72xf32> to vector<1x24xf32>
    %46 = vector.extract_strided_slice %35 {offsets = [3, 0], sizes = [1, 8], strides = [1, 1]} : vector<4x72xf32> to vector<1x8xf32>
    %47 = tpu.concatenate %45, %46 in 1 : vector<1x24xf32>, vector<1x8xf32> -> vector<1x32xf32>
    %48 = vector.extract_strided_slice %35 {offsets = [3, 8], sizes = [1, 32], strides = [1, 1]} : vector<4x72xf32> to vector<1x32xf32>
    %49 = vector.extract_strided_slice %35 {offsets = [3, 40], sizes = [1, 32], strides = [1, 1]} : vector<4x72xf32> to vector<1x32xf32>
    %50 = tpu.concatenate %36, %39, %40, %43, %44, %47, %48, %49 in 0 : vector<1x32xf32>, vector<1x32xf32>, vector<1x32xf32>, vector<1x32xf32>, vector<1x32xf32>, vector<1x32xf32>, vector<1x32xf32>, vector<1x32xf32> -> vector<8x32xf32>
    %c0_16 = arith.constant 0 : index
    %c0_17 = arith.constant 0 : index
    %51 = vector.load %arg6[%c0_16, %c0_17] : memref<32x32xf32, #tpu.memory_space<vmem>>, vector<32x32xf32>
    %52 = arith.truncf %50 : vector<8x32xf32> to vector<8x32xbf16>
    %53 = arith.truncf %51 : vector<32x32xf32> to vector<32x32xbf16>
    %cst_18 = arith.constant dense<0.000000e+00> : vector<8x32xf32>
    %54 = tpu.matmul %52, %53, %cst_18 {dimension_numbers = #tpu.dot_dimension_numbers<[1], [0], [0], [1], [0, 0, 1, 1], [], []>} : vector<8x32xbf16>, vector<32x32xbf16>, vector<8x32xf32> -> vector<8x32xf32>
    %c0_19 = arith.constant 0 : index
    %c0_20 = arith.constant 0 : index
    %55 = vector.load %arg7[%c0_19, %c0_20] : memref<1x32xf32, #tpu.memory_space<vmem>>, vector<1x32xf32>
    %56 = vector.broadcast %55 : vector<1x32xf32> to vector<8x32xf32>
    %57 = arith.addf %54, %56 : vector<8x32xf32>
    %c0_21 = arith.constant 0 : index
    %c0_22 = arith.constant 0 : index
    %58 = vector.load %arg8[%c0_21, %c0_22] : memref<8x32xf32, #tpu.memory_space<vmem>>, vector<8x32xf32>
    tpu.vector_store %arg8[%c0_21, %c0_22], %57 {strides = array<i32>} : memref<8x32xf32, #tpu.memory_space<vmem>>, vector<8x32xf32>,
    return
  }
}

</mosaic_0001>

<bundles_post_ra>
// kernel: causal_self_attention_forward.1
= control target key start
LH: loop header
LB: loop body
LE: loop exit
PB: predicated region body
PF: predicated region fallthrough
CT: control target
= control target key end

     0   :  { %v764_v3 = vmov 0.0   ;;  %vm765_vm0 = vmmov 0   ;;  %s1058_s0 = inlined_call_operand.vmem [shape: f32[8,32], index: 0, kind: input, shape index: {}]   ;;  %s1059_s1 = inlined_call_operand.vmem [shape: f32[64,8], index: 1, kind: input, shape index: {}]   ;;  %s1060_s2 = inlined_call_operand.vmem [shape: f32[64,8], index: 2, kind: input, shape index: {}]   ;;  %s1061_s3 = inlined_call_operand.vmem [shape: f32[64,8], index: 3, kind: input, shape index: {}]   ;;  %s1062_s4 = inlined_call_operand.vmem [shape: f32[32,24], index: 4, kind: input, shape index: {}]   ;;  %s1063_s5 = inlined_call_operand.vmem [shape: f32[1,24], index: 5, kind: input, shape index: {}]   ;;  %s1064_s6 = inlined_call_operand.vmem [shape: f32[32,32], index: 6, kind: input, shape index: {}]   ;;  %s1065_s7 = inlined_call_operand.vmem [shape: f32[1,32], index: 7, kind: input, shape index: {}]   ;;  %s1066_s8 = inlined_call_operand.hbm [shape: f32[8,32], index: 8, kind: output, shape index: {}]  }
   0x1   :  { %v32_v0 = vld [vmem:[%s1062_s4] sm:$0xff]  ;;  %v33_v1 = vld [vmem:[%s1062_s4 + $0x8] sm:$0xff]  ;;  %v34_v2 = vld [vmem:[%s1062_s4 + $0x10] sm:$0xff]  ;;  %624 = vmatprep.subr.bf16.mxu0 %v764_v3  ;;  %628 = vmatprep.mubr.msk.bf16.mxu0 %vm765_vm0, %v764_v3 }
   0x2   :  { %v37_v4 = vpack.c.bf16 %v33_v1, %v32_v0  ;;  %v35_v5 = vld [vmem:[%s1062_s4 + $0x18] sm:$0xff]  ;;  %632 = vmatprep.subr.bf16.mxu1 %v764_v3  ;;  %642 = vmatprep.mubr.msk.bf16.mxu1 %vm765_vm0, %v764_v3 }
   0x3   :  { %13 = vsyncpa [#allocation3], 0  ;;  %v38_v6 = vpack.c.bf16 %v35_v5, %v34_v2  ;;  %v31_v7 = vld [vmem:[%s1058_s0] sm:$0xff]  ;;  %vm46_vm1 = vcmask 261120   ;;  %v99_v10 = vld [vmem:[%s1060_s2 + $0x8] sm:$0xff]  ;;  %vm131_vm2 = vcmask 64512  }
   0x4   :  { %625 = vmatpush3.bf16.msra.mxu0 %v37_v4  ;;  %v36_v8 = vpack.c.bf16 %v31_v7, %v31_v7  ;;  %v98_v9 = vld [vmem:[%s1060_s2] sm:$0xff]  ;;  %v100_v12 = vld [vmem:[%s1060_s2 + $0x10] sm:$0xff]  ;;  %v101_v13 = vld [vmem:[%s1060_s2 + $0x18] sm:$0xff]  ;;  %s766_s9 = smov 112   ;;  %vm243_vm3 = vcmask 588800   ;;  %s771_s16 = smov 72  }
   0x5   :  { %626 = vmatprep.subr.bf16.mxu0 %v764_v3  ;;  %v126_v11 = vpack.c.bf16 %v99_v10, %v98_v9  ;;  %v127_v15 = vpack.c.bf16 %v101_v13, %v100_v12  ;;  %v102_v17 = vld [vmem:[%s1060_s2 + $0x20] sm:$0xff]  ;;  %v103_v18 = vld [vmem:[%s1060_s2 + $0x28] sm:$0xff]  ;;  %v104_v21 = vld [vmem:[%s1060_s2 + $0x30] sm:$0xff]  ;;  %s772_s17 = smov 8   ;;  %s773_s0 = smov 16   ;;  %vm462_vm4 = vcmask 130048  }
   0x6   :  { %v128_v19 = vpack.c.bf16 %v103_v18, %v102_v17  ;;  %v105_v22 = vld [vmem:[%s1060_s2 + $0x38] sm:$0xff]  ;;  %v592_v25 = vld [vmem:[%s1063_s5] ss:$0 sm:$0xff]  ;;  %s767_s2 = smov 120   ;;  %v112_v31 = vld [vmem:[%s1061_s3 + $0x10] sm:$0xff]  ;;  %s768_s5 = smov 124  }
   0x7   :  { %v148_v14 = vsel %vm131_vm2, %v126_v11, 0  ;;  %v151_v16 = vsel %vm131_vm2, %v127_v15, 0  ;;  %v129_v23 = vpack.c.bf16 %v105_v22, %v104_v21  ;;  %v113_v32 = vld [vmem:[%s1061_s3 + $0x18] sm:$0xff]  ;;  %v90_v37 = vld [vmem:[%s1059_s1] sm:$0xff]  ;;  %v91_v38 = vld [vmem:[%s1059_s1 + $0x8] sm:$0xff]  ;;  %s774_s18 = smov 24  }
   0x8   :  { %627 = vmatpush3.bf16.msra.mxu0 %v38_v6  ;;  %633 = vmatpush3.bf16.xpose.msra.mxu1 %v148_v14  ;;  %v154_v20 = vsel %vm131_vm2, %v128_v19, 0  ;;  %v344_v33 = vpack.c.bf16 %v113_v32, %v112_v31  ;;  %v121_v39 = vpack.c.bf16 %v91_v38, %v90_v37  ;;  %v92_v40 = vld [vmem:[%s1059_s1 + $0x10] sm:$0xff]  ;;  %v93_v41 = vld [vmem:[%s1059_s1 + $0x18] sm:$0xff]  ;;  %v94_v43 = vld [vmem:[%s1059_s1 + $0x20] sm:$0xff]  ;;  %vm470_vm5 = vcmask 195584   ;;  %s775_s25 = smov 32  }
   0x9   :  { %662 = vmatprep.subr.bf16.mxu0 %v764_v3  ;;  %634 = vmatprep.subr.bf16.mxu1 %v764_v3  ;;  %v157_v24 = vsel %vm131_vm2, %v129_v23, 0  ;;  %v122_v42 = vpack.c.bf16 %v93_v41, %v92_v40  ;;  %v95_v44 = vld [vmem:[%s1059_s1 + $0x28] sm:$0xff]  ;;  %v96_v46 = vld [vmem:[%s1059_s1 + $0x30] sm:$0xff]  ;;  %v97_v47 = vld [vmem:[%s1059_s1 + $0x38] sm:$0xff]  ;;  %vm503_vm6 = vcmask 1040384   ;;  %vm505_vm7 = vcmask 1041408  }
   0xa   :  { %v123_v45 = vpack.c.bf16 %v95_v44, %v94_v43  ;;  %v124_v48 = vpack.c.bf16 %v97_v47, %v96_v46  ;;  %v110_v10 = vld [vmem:[%s1061_s3] sm:$0xff]  ;;  %v111_v11 = vld [vmem:[%s1061_s3 + $0x8] sm:$0xff]  ;;  %vm507_vm8 = vcmask 1042432   ;;  %vm509_vm9 = vcmask 1043456   ;;  %s777_s28 = smov [#allocation2]  }
   0xb   :  { %629 = vmatmul.mubr.msk.bf16.vlgmr.msra.gmra.mrb[0].mxu0 %vm46_vm1, %v36_v8  ;;  %v343_v12 = vpack.c.bf16 %v111_v11, %v110_v10  ;;  %v116_v10 = vld [vmem:[%s1061_s3 + $0x30] sm:$0xff]  ;;  %v117_v11 = vld [vmem:[%s1061_s3 + $0x38] sm:$0xff]  ;;  %vm511_vm10 = vcmask 1044480   ;;  %vm513_vm11 = vcmask 1045504   ;;  %vm515_vm12 = vcmask 1046528   ;;  %s584_s29 = sshll.u32 %s777_s28, 4  ;;  %s585_s29 = int_to_ptr.vmem [resolvable:$true] %s584_s29 }
   0xc   :  { %672 = vmatprep.mubr.msk.bf16.mxu0 %vm765_vm0, %v764_v3  ;;  %s740_s30 = scalar_lea.vmem %s585_s29, 128  ;;  %p745_p1 = scmp.lt.s32.totalorder %s585_s29, %s585_s29 }
   0xd   :  { %p741_p0 = scmp.ne.s32.totalorder %s585_s29, %s740_s30  ;;  %p746_p2 = scmp.lt.s32.totalorder %s740_s30, %s740_s30 }
   0xf   :  { %p747_p3 = por %p746_p2, %p745_p1 }
  0x10   :  { %635 = vmatpush3.bf16.xpose.msra.mxu1 %v151_v16 }
  0x11   :  { %636 = vmatprep.subr.bf16.mxu1 %v764_v3  ;;  %p748_p4 = pnand %p747_p3, %p741_p0 }
  0x18   :  { %637 = vmatpush3.bf16.xpose.msra.mxu1 %v154_v20 }
  0x19   :  { %638 = vmatprep.subr.bf16.mxu1 %v764_v3 }
  0x20   :  { %639 = vmatpush3.bf16.xpose.msra.mxu1 %v157_v24 }
  0x21   :  { %640 = vmatprep.subr.bf16.mxu1 %v764_v3 }
  0xde   :  { %v84_v26 = vpop.f32.mrb[0].mxu0 }
  0xdf   :  { %v85_v27 = vadd.f32 %v592_v25, %v84_v26  ;;  %v630_v28 = vpop.f32.mrb[1].mxu0 }
  0xe0   :  { %v87_v29 = vpop.f32.mrb[2].mxu0  ;;  %v114_v28 = vld [vmem:[%s1061_s3 + $0x20] sm:$0xff] }
  0xe1   :  { %118 = vrot.lane.b32.xlu1 %v85_v27, %s766_s9  ;;  %107 = vrot.lane.b32.xlu0 %v85_v27, %s767_s2  ;;  %v631_v30 = vpop.f32.mrb[3].mxu0  ;;  %v125_v49 = vpack.c.bf16 %v85_v27, %v85_v27  ;;  %v115_v29 = vld [vmem:[%s1061_s3 + $0x28] sm:$0xff]  ;;  %s769_s3 = smov 80  }
  0xe2   :  { %v345_v30 = vpack.c.bf16 %v115_v29, %v114_v28 }
  0xe5   :  { %360 = vrot.lane.b32.xlu1 %v344_v33, %s768_s5 }
 0x153   :  { %v108_v34 = vpop.permute.xlu0 %107  ;;  %v119_v31 = vpop.permute.xlu1 %118 }
 0x154   :  { %v130_v35 = vpack.c.bf16 %v108_v34, %v108_v34 }
 0x156   :  { %v160_v36 = vsel %vm131_vm2, %v130_v35, 0 }
 0x157   :  { %641 = vmatpush3.bf16.xpose.msra.mxu1 %v160_v36  ;;  %v956_v32 = vpop.permute.xlu1 %360 }
 0x15e   :  { %643 = vmatmul.mubr.msk.bf16.vlgmr.msra.gmra.mrb[0].mxu1 %vm131_vm2, %v121_v39 }
 0x15f   :  { %646 = vmatprep.mubr.msk.bf16.mxu1 %vm765_vm0, %v764_v3 }
 0x166   :  { %647 = vmatmul.mubr.msk.bf16.gmra.mrb[4].mxu1 %vm131_vm2, %v122_v42 }
 0x167   :  { %650 = vmatprep.mubr.msk.bf16.mxu1 %vm765_vm0, %v764_v3 }
 0x16e   :  { %651 = vmatmul.mubr.msk.bf16.gmra.mrb[8].mxu1 %vm131_vm2, %v123_v45 }
 0x16f   :  { %654 = vmatprep.mubr.msk.bf16.mxu1 %vm765_vm0, %v764_v3 }
 0x176   :  { %655 = vmatmul.mubr.msk.bf16.gmra.mrb[12].mxu1 %vm131_vm2, %v124_v48 }
 0x177   :  { %658 = vmatprep.mubr.msk.bf16.mxu1 %vm765_vm0, %v764_v3 }
 0x17e   :  { %659 = vmatmul.mubr.msk.bf16.gmra.mrb[16].mxu1 %vm131_vm2, %v125_v49 }
 0x231   :  { %v196_v50 = vpop.f32.mrb[0].mxu1 }
 0x232   :  { %v234_v51 = vmul.f32 0.35355338, %v196_v50  ;;  %v644_v52 = vpop.f32.mrb[1].mxu1 }
 0x233   :  { %v199_v53 = vpop.f32.mrb[2].mxu1 }
 0x234   :  { %v235_v54 = vmul.f32 0.35355338, %v199_v53  ;;  %v645_v55 = vpop.f32.mrb[3].mxu1  ;;  %v244_v56 = vsel %vm243_vm3, %v234_v51, -inf }
 0x235   :  { %245 = vmax.xlane.f32.xlu0 %v244_v56 }
 0x236   :  { %v247_v57 = vsel %vm243_vm3, %v235_v54, -inf }
 0x237   :  { %248 = vmax.xlane.f32.xlu1 %v247_v57 }
 0x239   :  { %v204_v58 = vpop.f32.mrb[4].mxu1 }
 0x23a   :  { %v236_v59 = vmul.f32 0.35355338, %v204_v58  ;;  %v648_v60 = vpop.f32.mrb[5].mxu1 }
 0x23b   :  { %v207_v61 = vpop.f32.mrb[6].mxu1 }
 0x23c   :  { %v237_v62 = vmul.f32 0.35355338, %v207_v61  ;;  %v649_v63 = vpop.f32.mrb[7].mxu1  ;;  %v250_v0 = vsel %vm243_vm3, %v236_v59, -inf }
 0x23d   :  { %251 = vmax.xlane.f32.xlu1 %v250_v0 }
 0x23e   :  { %v253_v1 = vsel %vm243_vm3, %v237_v62, -inf }
 0x241   :  { %254 = vmax.xlane.f32.xlu1 %v253_v1  ;;  %v212_v2 = vpop.f32.mrb[8].mxu1 }
 0x242   :  { %v238_v4 = vmul.f32 0.35355338, %v212_v2  ;;  %v652_v5 = vpop.f32.mrb[9].mxu1 }
 0x243   :  { %v215_v6 = vpop.f32.mrb[10].mxu1 }
 0x244   :  { %v239_v7 = vmul.f32 0.35355338, %v215_v6  ;;  %v653_v8 = vpop.f32.mrb[11].mxu1  ;;  %v256_v9 = vsel %vm243_vm3, %v238_v4, -inf }
 0x245   :  { %257 = vmax.xlane.f32.xlu1 %v256_v9 }
 0x246   :  { %v259_v13 = vsel %vm243_vm3, %v239_v7, -inf }
 0x249   :  { %260 = vmax.xlane.f32.xlu1 %v259_v13  ;;  %v220_v14 = vpop.f32.mrb[12].mxu1  ;;  %v347_v13 = vpack.c.bf16 %v119_v31, %v119_v31 }
 0x24a   :  { %v240_v15 = vmul.f32 0.35355338, %v220_v14  ;;  %v656_v16 = vpop.f32.mrb[13].mxu1 }
 0x24b   :  { %v223_v17 = vpop.f32.mrb[14].mxu1  ;;  %358 = vrot.lane.b32.xlu0 %v343_v12, %s768_s5  ;;  %v346_v12 = vpack.c.bf16 %v117_v11, %v116_v10 }
 0x24c   :  { %v241_v18 = vmul.f32 0.35355338, %v223_v17  ;;  %v657_v19 = vpop.f32.mrb[15].mxu1  ;;  %v262_v20 = vsel %vm243_vm3, %v240_v15, -inf }
 0x24d   :  { %263 = vmax.xlane.f32.xlu1 %v262_v20 }
 0x24e   :  { %v265_v21 = vsel %vm243_vm3, %v241_v18, -inf }
 0x251   :  { %266 = vmax.xlane.f32.xlu1 %v265_v21  ;;  %v228_v22 = vpop.f32.mrb[16].mxu1 }
 0x252   :  { %v945_v23 = vmul.f32 0.35355338, %v228_v22  ;;  %v660_v24 = vpop.f32.mrb[17].mxu1 }
 0x253   :  { %v231_v25 = vpop.f32.mrb[18].mxu1 }
 0x254   :  { %v661_v26 = vpop.f32.mrb[19].mxu1  ;;  %v268_v27 = vsel %vm243_vm3, %v945_v23, -inf }
 0x255   :  { %269 = vmax.xlane.f32.xlu1 %v268_v27 }
 0x266   :  { %362 = vrot.lane.b32.xlu1 %v345_v30, %s768_s5 }
 0x2c2   :  { %v246_v33 = vpop.xlane.xlu0 %245 }
 0x2c3   :  { %v271_v34 = vsub.f32 %v234_v51, %v246_v33 }
 0x2c4   :  { %v249_v35 = vpop.xlane.xlu1 %248 }
 0x2c5   :  { %v280_v36 = vmul.f32 1.442695, %v271_v34  ;;  %v272_v37 = vsub.f32 %v235_v54, %v249_v35 }
 0x2c6   :  { %v359_v17 = vpop.permute.xlu0 %358 }
 0x2c7   :  { %704 = vpow2.f32 %v280_v36  ;;  %v282_v38 = vmul.f32 1.442695, %v272_v37 }
 0x2c9   :  { %706 = vpow2.f32 %v282_v38 }
 0x2ca   :  { %v252_v39 = vpop.xlane.xlu1 %251 }
 0x2cb   :  { %v273_v40 = vsub.f32 %v236_v59, %v252_v39 }
 0x2cd   :  { %v284_v41 = vmul.f32 1.442695, %v273_v40 }
 0x2ce   :  { %v255_v42 = vpop.xlane.xlu1 %254 }
 0x2cf   :  { %708 = vpow2.f32 %v284_v41  ;;  %v274_v43 = vsub.f32 %v237_v62, %v255_v42 }
 0x2d1   :  { %v958_v44 = vpop.eup %704  ;;  %v286_v45 = vmul.f32 1.442695, %v274_v43 }
 0x2d2   :  { %v258_v46 = vpop.xlane.xlu1 %257  ;;  %v298_v47 = vsel %vm243_vm3, %v958_v44, 0.0 }
 0x2d3   :  { %v962_v48 = vpop.eup %706  ;;  %710 = vpow2.f32 %v286_v45  ;;  %v275_v49 = vsub.f32 %v238_v4, %v258_v46  ;;  %299 = vadd.xlane.f32.xlu0 %v298_v47 }
 0x2d4   :  { %v301_v52 = vsel %vm243_vm3, %v962_v48, 0.0 }
 0x2d5   :  { %v288_v50 = vmul.f32 1.442695, %v275_v49 }
 0x2d6   :  { %v261_v51 = vpop.xlane.xlu1 %260 }
 0x2d7   :  { %712 = vpow2.f32 %v288_v50  ;;  %v276_v53 = vsub.f32 %v239_v7, %v261_v51  ;;  %302 = vadd.xlane.f32.xlu0 %v301_v52 }
 0x2d9   :  { %v966_v54 = vpop.eup %708  ;;  %v290_v55 = vmul.f32 1.442695, %v276_v53 }
 0x2da   :  { %v264_v56 = vpop.xlane.xlu1 %263  ;;  %v304_v57 = vsel %vm243_vm3, %v966_v54, 0.0 }
 0x2db   :  { %714 = vpow2.f32 %v290_v55  ;;  %v277_v58 = vsub.f32 %v240_v15, %v264_v56  ;;  %305 = vadd.xlane.f32.xlu0 %v304_v57 }
 0x2dd   :  { %v970_v59 = vpop.eup %710  ;;  %v292_v60 = vmul.f32 1.442695, %v277_v58 }
 0x2de   :  { %v267_v61 = vpop.xlane.xlu1 %266  ;;  %v307_v62 = vsel %vm243_vm3, %v970_v59, 0.0 }
 0x2df   :  { %716 = vpow2.f32 %v292_v60  ;;  %v278_v63 = vsub.f32 %v241_v18, %v267_v61  ;;  %308 = vadd.xlane.f32.xlu0 %v307_v62 }
 0x2e1   :  { %v974_v0 = vpop.eup %712  ;;  %v294_v1 = vmul.f32 1.442695, %v278_v63 }
 0x2e2   :  { %v310_v2 = vsel %vm243_vm3, %v974_v0, 0.0  ;;  %v270_v14 = vpop.xlane.xlu1 %269 }
 0x2e3   :  { %718 = vpow2.f32 %v294_v1  ;;  %311 = vadd.xlane.f32.xlu1 %v310_v2  ;;  %v279_v15 = vsub.f32 %v945_v23, %v270_v14 }
 0x2e5   :  { %v978_v4 = vpop.eup %714  ;;  %v296_v16 = vmul.f32 1.442695, %v279_v15 }
 0x2e6   :  { %v313_v5 = vsel %vm243_vm3, %v978_v4, 0.0  ;;  %v363_v20 = vpop.permute.xlu1 %362 }
 0x2e7   :  { %314 = vadd.xlane.f32.xlu0 %v313_v5  ;;  %720 = vpow2.f32 %v296_v16  ;;  %v517_v16 = vld [vmem:[%s1064_s6] sm:$0xff] }
 0x2e9   :  { %v982_v6 = vpop.eup %716 }
 0x2ea   :  { %v316_v7 = vsel %vm243_vm3, %v982_v6, 0.0 }
 0x2eb   :  { %317 = vadd.xlane.f32.xlu0 %v316_v7 }
 0x2ed   :  { %v986_v8 = vpop.eup %718 }
 0x2ee   :  { %v319_v9 = vsel %vm243_vm3, %v986_v8, 0.0 }
 0x2ef   :  { %320 = vadd.xlane.f32.xlu1 %v319_v9 }
 0x2f1   :  { %v721_v18 = vpop.eup %720 }
 0x2f2   :  { %v322_v19 = vsel %vm243_vm3, %v721_v18, 0.0 }
 0x300   :  { %366 = vrot.lane.b32.xlu1 %v347_v13, %s768_s5 }
 0x301   :  { %364 = vrot.lane.b32.xlu0 %v346_v12, %s768_s5  ;;  %s770_s5 = smov 64  }
 0x31f   :  { %373 = vxpose.xlu0.c.b16.start [1/5] (short) (narrow) %v359_v17, 16  ;;  %v518_v17 = vld [vmem:[%s1064_s6 + $0x8] sm:$0xff] }
 0x323   :  { %374 = vxpose.xlu0.c.b16.cont [2/5] (short) (narrow) %v956_v32, 16 }
 0x324   :  { %323 = vadd.xlane.f32.xlu1 %v322_v19 }
 0x327   :  { %375 = vxpose.xlu0.c.b16.cont [3/5] (short) (narrow) %v363_v20, 16  ;;  %v522_v20 = vpack.c.bf16 %v518_v17, %v517_v16 }
 0x360   :  { %v300_v21 = vpop.xlane.xlu0 %299 }
 0x361   :  { %722 = vrcp.f32 %v300_v21  ;;  %v520_v21 = vld [vmem:[%s1064_s6 + $0x18] sm:$0xff] }
 0x364   :  { %v303_v22 = vpop.xlane.xlu0 %302 }
 0x365   :  { %724 = vrcp.f32 %v303_v22 }
 0x368   :  { %v306_v24 = vpop.xlane.xlu0 %305 }
 0x369   :  { %726 = vrcp.f32 %v306_v24 }
 0x36b   :  { %v723_v23 = vpop.eup %722 }
 0x36c   :  { %v309_v25 = vpop.xlane.xlu0 %308  ;;  %v334_v28 = vmul.f32 %v723_v23, %v958_v44 }
 0x36d   :  { %728 = vrcp.f32 %v309_v25 }
 0x36f   :  { %v725_v26 = vpop.eup %724 }
 0x370   :  { %v312_v27 = vpop.xlane.xlu1 %311  ;;  %v335_v29 = vmul.f32 %v725_v26, %v962_v48 }
 0x371   :  { %730 = vrcp.f32 %v312_v27 }
 0x372   :  { %v348_v30 = vpack.c.bf16 %v335_v29, %v334_v28 }
 0x373   :  { %v727_v33 = vpop.eup %726 }
 0x374   :  { %v315_v31 = vpop.xlane.xlu0 %314  ;;  %v393_v32 = vsel %vm243_vm3, %v348_v30, 0  ;;  %v336_v36 = vmul.f32 %v727_v33, %v966_v54 }
 0x375   :  { %732 = vrcp.f32 %v315_v31  ;;  %663 = vmatpush3.bf16.xpose.msra.mxu0 %v393_v32 }
 0x376   :  { %664 = vmatprep.subr.bf16.mxu0 %v764_v3 }
 0x377   :  { %v729_v34 = vpop.eup %728 }
 0x378   :  { %v318_v35 = vpop.xlane.xlu0 %317  ;;  %v337_v37 = vmul.f32 %v729_v34, %v970_v59 }
 0x379   :  { %734 = vrcp.f32 %v318_v35 }
 0x37a   :  { %v349_v38 = vpack.c.bf16 %v337_v37, %v336_v36 }
 0x37b   :  { %v731_v42 = vpop.eup %730 }
 0x37c   :  { %v365_v39 = vpop.permute.xlu0 %364  ;;  %v321_v40 = vpop.xlane.xlu1 %320  ;;  %v396_v41 = vsel %vm243_vm3, %v349_v38, 0  ;;  %v338_v45 = vmul.f32 %v731_v42, %v974_v0  ;;  %v600_v42 = vld [vmem:[%s1065_s7] ss:$0 sm:$0xff] }
 0x37d   :  { %736 = vrcp.f32 %v321_v40  ;;  %665 = vmatpush3.bf16.xpose.msra.mxu0 %v396_v41  ;;  %376 = vxpose.xlu0.c.b16.cont [4/5] (short) (narrow) %v365_v39, 16 }
 0x37e   :  { %666 = vmatprep.subr.bf16.mxu0 %v764_v3 }
 0x37f   :  { %v733_v43 = vpop.eup %732 }
 0x380   :  { %v367_v44 = vpop.permute.xlu1 %366  ;;  %v339_v46 = vmul.f32 %v733_v43, %v978_v4 }
 0x381   :  { %377 = vxpose.xlu0.c.b16.end [5/5] (short) (narrow) %v367_v44, 16 }
 0x382   :  { %v350_v47 = vpack.c.bf16 %v339_v46, %v338_v45 }
 0x383   :  { %v735_v49 = vpop.eup %734 }
 0x384   :  { %v399_v48 = vsel %vm243_vm3, %v350_v47, 0  ;;  %v340_v51 = vmul.f32 %v735_v49, %v982_v6 }
 0x385   :  { %667 = vmatpush3.bf16.xpose.msra.mxu0 %v399_v48 }
 0x386   :  { %668 = vmatprep.subr.bf16.mxu0 %v764_v3 }
 0x387   :  { %v737_v50 = vpop.eup %736 }
 0x388   :  { %v341_v52 = vmul.f32 %v737_v50, %v986_v8 }
 0x38a   :  { %v351_v53 = vpack.c.bf16 %v341_v52, %v340_v51 }
 0x38c   :  { %v402_v54 = vsel %vm243_vm3, %v351_v53, 0 }
 0x38d   :  { %669 = vmatpush3.bf16.xpose.msra.mxu0 %v402_v54 }
 0x38e   :  { %670 = vmatprep.subr.bf16.mxu0 %v764_v3 }
 0x3b1   :  { %v324_v55 = vpop.xlane.xlu1 %323 }
 0x3b2   :  { %738 = vrcp.f32 %v324_v55 }
 0x3bc   :  { %v739_v56 = vpop.eup %738 }
 0x3bd   :  { %v342_v57 = vmul.f32 %v739_v56, %v721_v18  ;;  %v519_v18 = vld [vmem:[%s1064_s6 + $0x10] sm:$0xff]  ;;  %s776_s6 = smov 96  }
 0x3be   :  { %v523_v24 = vpack.c.bf16 %v520_v21, %v519_v18 }
 0x3bf   :  { %v352_v58 = vpack.c.bf16 %v342_v57, %v342_v57 }
 0x3c1   :  { %v405_v59 = vsel %vm243_vm3, %v352_v58, 0 }
 0x3c2   :  { %671 = vmatpush3.bf16.xpose.msra.mxu0 %v405_v59 }
 0x3c3   :  { %676 = vmatprep.subr.bf16.mxu0 %v764_v3 }
 0x3d7   :  { %v381_v60 = vpop.trf.xlu0 }
 0x3d8   :  { %673 = vmatmul.mubr.msk.bf16.vlgmr.msra.gmra.mrb[4].mxu0 %vm243_vm3, %v381_v60 }
 0x3d9   :  { %680 = vmatprep.mubr.msk.bf16.mxu0 %vm765_vm0, %v764_v3  ;;  %677 = vmatpush3.bf16.msra.mxu0 %v522_v20 }
 0x3da   :  { %678 = vmatprep.subr.bf16.mxu0 %v764_v3 }
 0x3dd   :  { %679 = vmatpush3.bf16.msra.mxu0 %v523_v24 }
 0x4ab   :  { %v441_v61 = vpop.f32.mrb[4].mxu0 }
 0x4ac   :  { %464 = vrot.lane.b32.xlu0 %v441_v61, %s769_s3  ;;  %448 = vrot.lane.b32.xlu1 %v441_v61, %s770_s5  ;;  %v674_v62 = vpop.f32.mrb[5].mxu0  ;;  %v477_v1 = vrot.slane %v441_v61, 7  ;;  %v451_v2 = vrot.slane %v441_v61, 1  ;;  %v486_v22 = vrot.slane %v441_v61, 6  ;;  %v499_v25 = vrot.slane %v441_v61, 4 }
 0x4ad   :  { %v444_v63 = vpop.f32.mrb[6].mxu0  ;;  %v495_v23 = vrot.slane %v441_v61, 5 }
 0x4ae   :  { %v675_v0 = vpop.f32.mrb[7].mxu0 }
 0x4b0   :  { %456 = vrot.lane.b32.xlu1 %v441_v61, %s771_s16  ;;  %478 = vrot.lane.b32.xlu0 %v477_v1, %s772_s17 }
 0x4b4   :  { %452 = vrot.lane.b32.xlu1 %v451_v2, %s772_s17 }
 0x4b8   :  { %459 = vrot.lane.b32.xlu1 %v451_v2, %s773_s0 }
 0x4bc   :  { %467 = vrot.lane.b32.xlu1 %v451_v2, %s774_s18 }
 0x51e   :  { %v449_v4 = vpop.permute.xlu1 %448  ;;  %v465_v12 = vpop.permute.xlu0 %464 }
 0x522   :  { %v457_v5 = vpop.permute.xlu1 %456  ;;  %v479_v26 = vpop.permute.xlu0 %478 }
 0x526   :  { %v453_v6 = vpop.permute.xlu1 %452 }
 0x527   :  { %v455_v7 = vsel %vm131_vm2, %v449_v4, %v453_v6 }
 0x528   :  { %v473_v10 = vrot.slane %v455_v7, 7 }
 0x52a   :  { %v460_v8 = vpop.permute.xlu1 %459 }
 0x52b   :  { %v463_v9 = vsel %vm462_vm4, %v457_v5, %v460_v8 }
 0x52c   :  { %v482_v11 = vrot.slane %v463_v9, 6 }
 0x52e   :  { %v468_v13 = vpop.permute.xlu1 %467  ;;  %v699_v14 = vpack.i.bf16 %v482_v11, %v473_v10 }
 0x52f   :  { %v471_v15 = vsel %vm470_vm5, %v465_v12, %v468_v13 }
 0x530   :  { %v491_v19 = vrot.slane %v471_v15, 5  ;;  %700 = vrot.lane.b32.xlu1 %v699_v14, %s775_s25 }
 0x532   :  { %492 = vrot.lane.b32.xlu0 %v491_v19, %s775_s25 }
 0x534   :  { %487 = vrot.lane.b32.xlu1 %v486_v22, %s773_s0 }
 0x536   :  { %500 = vrot.lane.b32.xlu0 %v499_v25, %s767_s2 }
 0x538   :  { %496 = vrot.lane.b32.xlu1 %v495_v23, %s774_s18 }
 0x5a2   :  { %v701_v27 = vpop.permute.xlu1 %700 }
 0x5a3   :  { %v702_v28 = vunpack.i.l.bf16 %v701_v27  ;;  %v703_v29 = vunpack.i.h.bf16 %v701_v27 }
 0x5a4   :  { %v493_v31 = vpop.permute.xlu0 %492 }
 0x5a5   :  { %v504_v30 = vsel %vm503_vm6, %v441_v61, %v702_v28 }
 0x5a6   :  { %v488_v3 = vpop.permute.xlu1 %487  ;;  %v506_v32 = vsel %vm505_vm7, %v504_v30, %v479_v26 }
 0x5a7   :  { %v508_v33 = vsel %vm507_vm8, %v506_v32, %v703_v29 }
 0x5a8   :  { %v510_v34 = vsel %vm509_vm9, %v508_v33, %v488_v3  ;;  %v501_v37 = vpop.permute.xlu0 %500 }
 0x5a9   :  { %v512_v35 = vsel %vm511_vm10, %v510_v34, %v493_v31 }
 0x5aa   :  { %v497_v36 = vpop.permute.xlu1 %496 }
 0x5ab   :  { %v514_v38 = vsel %vm513_vm11, %v512_v35, %v497_v36 }
 0x5ac   :  { %v516_v39 = vsel %vm515_vm12, %v514_v38, %v501_v37 }
 0x5ad   :  { %v521_v40 = vpack.c.bf16 %v516_v39, %v516_v39 }
 0x5af   :  { %532 = vrot.lane.b32.xlu1 %v521_v40, %s776_s6 }
 0x621   :  { %v533_v41 = vpop.permute.xlu1 %532 }
 0x622   :  { %681 = vmatmul.mubr.msk.bf16.vlgmr.msra.gmra.mrb[8].mxu0 %vm46_vm1, %v533_v41 }
 0x6f5   :  { %v571_v43 = vpop.f32.mrb[8].mxu0 }
 0x6f6   :  { %v572_v44 = vadd.f32 %v600_v42, %v571_v43  ;;  %v682_v45 = vpop.f32.mrb[9].mxu0 }
 0x6f7   :  { %v574_v46 = vpop.f32.mrb[10].mxu0 }
 0x6f8   :  { %577 = vst.msk [vmem:[#allocation2] sm:$0xff] %vm46_vm1, %v572_v44  ;;  %v683_v47 = vpop.f32.mrb[11].mxu0 }
 0x6f9   :  { %751 = shalt.err (!%p748_p4)
}
 0x6fa   :  { %s752_s7 = scalar_lea.hbm %s1066_s8, 128 }
 0x6fb   :  { %p753_p5 = scmp.ne.s32.totalorder %s1066_s8, %s752_s7  ;;  %p756_p6 = scmp.lt.u32.totalorder %s752_s7, %s1066_s8 }
 0x6fd   :  { %p758_p7 = pnand %p756_p6, %p753_p5 }
 0x6ff   :  { %761 = shalt.err (!%p758_p7)
}
 0x700   :  { %587 = dma.vmem_to_hbm [thread:$0]  %s585_s29, 128, %s1066_s8, [#allocation3]  }
 0x701   :  { %762 = dma.done.wait [#allocation3], 128  }
 0x702   :  { %763 = vsyncadd [#allocation3], 4294967168 }
 0x703   :  { %591 = vsyncpa [#allocation3], 1 }

</bundles_post_ra>
